<compile_context>
chip_gen: v6e
topology: v6e:2x2x1
jax: 0.10.0
libtpu: 0.0.40
codegen_flags: <defaults>
</compile_context>

<pallas_src>
import functools

import jax
import jax.numpy as jnp
from jax.experimental import pallas as pl
from jax.experimental.pallas import tpu as pltpu


def _transe_tile_kernel(ent_ref, rel_ref, out_ref, acc_ref, *, margin, norm_p,
                        C, valid_batch, tile_b, needs_mask):
    """Process one batch tile; accumulate partial sums in per-core SMEM scratch.

    ent_ref: (4, TB, D) slots [h, t, h_c, t_c];  rel_ref: (2, TB, D) slots [r, r_c].
    Grid is (core, tile): axis 0 is the parallel (megacore) axis, axis 1 is the
    sequential accumulation axis.
    """
    i = pl.program_id(1)

    @pl.when(i == 0)
    def _init():
        acc_ref[0] = jnp.float32(0.0)   # sum of hinge terms
        acc_ref[1] = jnp.float32(0.0)   # entity scale-loss sum
        acc_ref[2] = jnp.float32(0.0)   # relation scale-loss sum

    # Upcast to f32 immediately after load (no-op for f32 transport).
    h = ent_ref[0].astype(jnp.float32)
    t = ent_ref[1].astype(jnp.float32)
    hc = ent_ref[2].astype(jnp.float32)
    tc = ent_ref[3].astype(jnp.float32)
    r = rel_ref[0].astype(jnp.float32)
    rc = rel_ref[1].astype(jnp.float32)

    d_pos = h + r - t
    d_neg = hc + rc - tc
    if norm_p == 1:
        pos = jnp.sum(jnp.abs(d_pos), axis=1, keepdims=True)
        neg = jnp.sum(jnp.abs(d_neg), axis=1, keepdims=True)
    else:  # p = 2
        pos = jnp.sqrt(jnp.sum(d_pos * d_pos, axis=1, keepdims=True))
        neg = jnp.sqrt(jnp.sum(d_neg * d_neg, axis=1, keepdims=True))

    # MarginRankingLoss(margin, reduction='mean') with y = -1:
    #   mean(max(0, pos - neg + margin)); the mean is applied in the finalize.
    hinge = jnp.maximum(pos - neg + margin, 0.0)                     # (TB, 1)

    def row_scale(x):                                                # (TB, 1)
        return jnp.maximum(jnp.sum(x * x, axis=1, keepdims=True) - 1.0, 0.0)

    # Sum per-row vectors first; only one cross-lane reduction per accumulator.
    ent_scale = row_scale(h) + row_scale(t) + row_scale(hc) + row_scale(tc)
    rel_scale = row_scale(r) + row_scale(rc)

    if needs_mask:
        # Rows past the true batch (ragged last tile, or tiles assigned to the
        # second core beyond cdiv(B, TB)) contain unspecified data; zero out
        # BOTH the hinge and the scale contributions for them.
        g_tile = pl.program_id(0) * pl.num_programs(1) + i
        gid = (jax.lax.broadcasted_iota(jnp.int32, (tile_b, 1), 0)
               + g_tile * tile_b)
        valid = gid < valid_batch
        hinge = jnp.where(valid, hinge, 0.0)
        ent_scale = jnp.where(valid, ent_scale, 0.0)
        rel_scale = jnp.where(valid, rel_scale, 0.0)

    acc_ref[0] = acc_ref[0] + jnp.sum(hinge)
    acc_ref[1] = acc_ref[1] + jnp.sum(ent_scale)
    acc_ref[2] = acc_ref[2] + jnp.sum(rel_scale)

    @pl.when(i == pl.num_programs(1) - 1)
    def _finalize():
        inv_b = jnp.float32(1.0 / float(valid_batch))
        rank_loss = acc_ref[0] * inv_b
        # len(entity_embedding) = 4B, len(relation_embedding) = 2B.
        reg = jnp.float32(C) * (acc_ref[1] * (inv_b * 0.25)
                                + acc_ref[2] * (inv_b * 0.5))
        # Lane-dense broadcast write of this core's partial result.
        out_ref[...] = (rank_loss + reg) * jnp.ones((1, 8, 128), jnp.float32)


def _round_up(x, m):
    return ((x + m - 1) // m) * m


def _vmem_budget_bytes():
    """Return (scoped vmem limit, double-buffer budget) for this TPU generation."""
    vmem_phys = 64 * 1024 * 1024  # assume v7x-class if we cannot query
    try:
        info = pltpu.get_tpu_info()
        cap = getattr(info, "vmem_capacity_bytes", None)
        if cap:
            vmem_phys = int(cap)
    except Exception:
        pass
    if vmem_phys >= 128 * 1024 * 1024:
        # v5e / v6e: 128 MiB physical VMEM — raise the scoped limit, big tiles.
        return 64 * 1024 * 1024, 40 * 1024 * 1024
    # v7x (64 MiB physical) or unknown: stay under the 32 MiB scoped limit.
    return 32 * 1024 * 1024, 20 * 1024 * 1024


def _pick_tile_b(batch, dim, transport_dtype, budget_bytes, requested=None):
    """Rows per tile: multiple of the packed sublane tile, sized against the
    double-buffered VMEM budget (lane padding for D < 128 accounted for)."""
    itemsize = jnp.dtype(transport_dtype).itemsize
    sub = max(8, 32 // itemsize)              # 8 (f32), 16 (bf16), 32 (int8/fp8)
    d_pad = _round_up(dim, 128)               # lanes are padded in VMEM
    row_bytes = 6 * d_pad * itemsize          # 6 operand rows per batch row
    if requested is not None:
        tb = max(sub, _round_up(int(requested), sub))
    else:
        tb = max(sub, (int(budget_bytes // (2 * row_bytes)) // sub) * sub)
    if tb >= batch:
        return int(batch)                     # single full-extent block (legal)
    return int(tb)


def transe_forward(ent_emb, rel_emb, current_triples, corrupted_triples,
                   *, margin, norm_p, C, tile_b=None,
                   transport_dtype=jnp.float32):
    """Forward pass of module E. Triples are int32 arrays of shape (B, 3)."""
    if norm_p not in (1, 2):
        raise NotImplementedError("norm_p must be 1 or 2")

    h, r, t = (current_triples[:, 0], current_triples[:, 1],
               current_triples[:, 2])
    hc, rc, tc = (corrupted_triples[:, 0], corrupted_triples[:, 1],
                  corrupted_triples[:, 2])

    B = current_triples.shape[0]
    D = ent_emb.shape[1]

    # Fused gathers (one take per table); the optional transport cast fuses into
    # the gather and the reshapes below are free views — no extra HBM pass.
    ent_idx = jnp.concatenate([h, t, hc, tc], axis=0)            # (4B,)
    rel_idx = jnp.concatenate([r, rc], axis=0)                   # (2B,)
    ent_rows = jnp.take(ent_emb, ent_idx, axis=0)                # (4B, D)
    rel_rows = jnp.take(rel_emb, rel_idx, axis=0)                # (2B, D)
    if ent_rows.dtype != transport_dtype:
        ent_rows = ent_rows.astype(transport_dtype)
        rel_rows = rel_rows.astype(transport_dtype)
    ent_rows = ent_rows.reshape(4, B, D)                         # [h, t, hc, tc]
    rel_rows = rel_rows.reshape(2, B, D)                         # [r, rc]

    vmem_limit, buf_budget = _vmem_budget_bytes()
    TB = _pick_tile_b(B, D, transport_dtype, buf_budget, requested=tile_b)
    n_tiles = pl.cdiv(B, TB)

    # 2-way grid split across TensorCores (v7x); serializes on v5e/v6e.
    NC = 2 if n_tiles >= 2 else 1
    tiles_per_core = pl.cdiv(n_tiles, NC)
    needs_mask = (NC * tiles_per_core * TB != B)

    kernel = functools.partial(
        _transe_tile_kernel,
        margin=float(margin), norm_p=int(norm_p), C=float(C),
        valid_batch=int(B), tile_b=int(TB), needs_mask=bool(needs_mask))

    def in_map(c, i):
        return (0, c * tiles_per_core + i, 0)

    def out_map(c, i):
        return (c, 0, 0)

    out = pl.pallas_call(
        kernel,
        grid=(NC, tiles_per_core),
        in_specs=[pl.BlockSpec((4, TB, D), in_map),
                  pl.BlockSpec((2, TB, D), in_map)],
        out_specs=pl.BlockSpec((1, 8, 128), out_map),
        out_shape=jax.ShapeDtypeStruct((NC, 8, 128), jnp.float32),
        scratch_shapes=[pltpu.SMEM((3,), jnp.float32)],   # per-core accumulators
        compiler_params=pltpu.CompilerParams(
            dimension_semantics=("parallel", "arbitrary"),
            vmem_limit_bytes=vmem_limit,
        ),
    )(ent_rows, rel_rows)

    # Sum the per-core partials (each already divided by the GLOBAL batch size).
    return jnp.sum(out[:, 0, 0])


def _init_embedding(key, num, dim):
    """Deterministic xavier_uniform followed by row L2-normalization
    (mirrors __data_init + normalization_*_embedding)."""
    limit = jnp.sqrt(6.0 / (num + dim))
    w = jax.random.uniform(key, (num, dim), jnp.float32, -limit, limit)
    return w / jnp.sqrt(jnp.sum(w * w, axis=1, keepdims=True))


def _ref_forward(ent_emb, rel_emb, cur, cor, margin, norm_p, C):
    """Pure-JAX reference for validation."""
    def gather(trip):
        h, r, t = trip[:, 0], trip[:, 1], trip[:, 2]
        return ent_emb[h], rel_emb[r], ent_emb[t]

    h_e, r_e, t_e = gather(cur)
    hc_e, rc_e, tc_e = gather(cor)

    def pnorm(x):
        if norm_p == 1:
            return jnp.sum(jnp.abs(x), axis=1)
        return jnp.sqrt(jnp.sum(x * x, axis=1))

    pos = pnorm(h_e + r_e - t_e)
    neg = pnorm(hc_e + rc_e - tc_e)
    rank_loss = jnp.mean(jnp.maximum(pos - neg + margin, 0.0))

    ent_stack = jnp.concatenate([h_e, t_e, hc_e, tc_e], axis=0)
    rel_stack = jnp.concatenate([r_e, rc_e], axis=0)

    def scale(x):
        return jnp.sum(jnp.maximum(jnp.sum(x * x, axis=1) - 1.0, 0.0))

    return rank_loss + C * (scale(ent_stack) / ent_stack.shape[0]
                            + scale(rel_stack) / rel_stack.shape[0])


def _make_triples(key, batch, entity_num, relation_num):
    kh, kr, kt = jax.random.split(key, 3)
    return jnp.stack([
        jax.random.randint(kh, (batch,), 0, entity_num),
        jax.random.randint(kr, (batch,), 0, relation_num),
        jax.random.randint(kt, (batch,), 0, entity_num),
    ], axis=1).astype(jnp.int32)


if __name__ == "__main__":
    entity_num, relation_num, dim = 64, 16, 32
    margin, norm_p, C = 1.0, 2, 0.25

    key = jax.random.PRNGKey(0)
    k_ent, k_rel, k_cur, k_cor, k_cur2, k_cor2 = jax.random.split(key, 6)

    ent_emb = _init_embedding(k_ent, entity_num, dim)
    rel_emb = _init_embedding(k_rel, relation_num, dim)

    # ---- Run 1: f32 transport, batch=20 with tile_b=8 -> 3 real tiles split
    #      over a (2, 2) grid, last tiles masked in-kernel (exercises the
    #      per-core accumulator + ragged-tile path). ----
    batch = 20
    cur = _make_triples(k_cur, batch, entity_num, relation_num)
    cor = _make_triples(k_cor, batch, entity_num, relation_num)

    fwd_f32 = jax.jit(functools.partial(
        transe_forward, margin=margin, norm_p=norm_p, C=C, tile_b=8))
    out = jax.block_until_ready(fwd_f32(ent_emb, rel_emb, cur, cor))
    ref = _ref_forward(ent_emb, rel_emb, cur, cor, margin, norm_p, C)
    assert jnp.allclose(out, ref, atol=1e-5, rtol=1e-4), (out, ref)

    # ---- Run 2: bf16 transport (halves HBM read bytes; f32 math in-kernel),
    #      single full-extent tile chosen automatically. ----
    batch2 = 8
    cur2 = _make_triples(k_cur2, batch2, entity_num, relation_num)
    cor2 = _make_triples(k_cor2, batch2, entity_num, relation_num)

    fwd_bf16 = jax.jit(functools.partial(
        transe_forward, margin=margin, norm_p=norm_p, C=C,
        transport_dtype=jnp.bfloat16))
    out2 = jax.block_until_ready(fwd_bf16(ent_emb, rel_emb, cur2, cor2))
    ref2 = _ref_forward(ent_emb, rel_emb, cur2, cor2, margin, norm_p, C)
    assert jnp.allclose(out2, ref2, atol=5e-2, rtol=5e-2), (out2, ref2)

    print("KERNEL_OK")
</pallas_src>

<mosaic_0001>
module attributes {stable_mosaic.version = 11 : i64} {
  func.func @_transe_tile_kernel(%arg0: i32, %arg1: i32, %arg2: memref<4x8x32xf32, #tpu.memory_space<vmem>>, %arg3: memref<2x8x32xf32, #tpu.memory_space<vmem>>, %arg4: memref<1x8x128xf32, #tpu.memory_space<vmem>>, %arg5: memref<3xf32, #tpu.memory_space<smem>>) attributes {dimension_semantics = [#tpu.dimension_semantics<parallel>, #tpu.dimension_semantics<arbitrary>], iteration_bounds = array<i64: 2, 2>, scalar_prefetch = 0 : i64, scratch_operands = 1 : i64, tpu.core_type = #tpu.core_type<tc>, window_params = [{transform_indices = @transform_0, window_bounds = array<i64: 4, 8, 32>}, {transform_indices = @transform_1, window_bounds = array<i64: 2, 8, 32>}, {transform_indices = @transform_2, window_bounds = array<i64: 1, 8, 128>}]} {
    %c0_i32 = arith.constant 0 : i32
    %0 = arith.cmpi eq, %arg1, %c0_i32 : i32
    %1 = arith.extui %0 : i1 to i32
    %c0_i32_0 = arith.constant 0 : i32
    %2 = arith.cmpi ne, %1, %c0_i32_0 : i32
    scf.if %2 {
      %cst_49 = arith.constant 0.000000e+00 : f32
      %c0_50 = arith.constant 0 : index
      %116 = memref.load %arg5[%c0_50] : memref<3xf32, #tpu.memory_space<smem>>
      memref.store %cst_49, %arg5[%c0_50] : memref<3xf32, #tpu.memory_space<smem>>
      %cst_51 = arith.constant 0.000000e+00 : f32
      %c1_52 = arith.constant 1 : index
      %117 = memref.load %arg5[%c1_52] : memref<3xf32, #tpu.memory_space<smem>>
      memref.store %cst_51, %arg5[%c1_52] : memref<3xf32, #tpu.memory_space<smem>>
      %cst_53 = arith.constant 0.000000e+00 : f32
      %c2_54 = arith.constant 2 : index
      %118 = memref.load %arg5[%c2_54] : memref<3xf32, #tpu.memory_space<smem>>
      memref.store %cst_53, %arg5[%c2_54] : memref<3xf32, #tpu.memory_space<smem>>
    } else {
    }
    %c0 = arith.constant 0 : index
    %c0_1 = arith.constant 0 : index
    %c0_2 = arith.constant 0 : index
    %3 = vector.load %arg2[%c0, %c0_1, %c0_2] : memref<4x8x32xf32, #tpu.memory_space<vmem>>, vector<1x8x32xf32>
    %4 = vector.shape_cast %3 : vector<1x8x32xf32> to vector<8x32xf32>
    %c1 = arith.constant 1 : index
    %c0_3 = arith.constant 0 : index
    %c0_4 = arith.constant 0 : index
    %5 = vector.load %arg2[%c1, %c0_3, %c0_4] : memref<4x8x32xf32, #tpu.memory_space<vmem>>, vector<1x8x32xf32>
    %6 = vector.shape_cast %5 : vector<1x8x32xf32> to vector<8x32xf32>
    %c2 = arith.constant 2 : index
    %c0_5 = arith.constant 0 : index
    %c0_6 = arith.constant 0 : index
    %7 = vector.load %arg2[%c2, %c0_5, %c0_6] : memref<4x8x32xf32, #tpu.memory_space<vmem>>, vector<1x8x32xf32>
    %8 = vector.shape_cast %7 : vector<1x8x32xf32> to vector<8x32xf32>
    %c3 = arith.constant 3 : index
    %c0_7 = arith.constant 0 : index
    %c0_8 = arith.constant 0 : index
    %9 = vector.load %arg2[%c3, %c0_7, %c0_8] : memref<4x8x32xf32, #tpu.memory_space<vmem>>, vector<1x8x32xf32>
    %10 = vector.shape_cast %9 : vector<1x8x32xf32> to vector<8x32xf32>
    %c0_9 = arith.constant 0 : index
    %c0_10 = arith.constant 0 : index
    %c0_11 = arith.constant 0 : index
    %11 = vector.load %arg3[%c0_9, %c0_10, %c0_11] : memref<2x8x32xf32, #tpu.memory_space<vmem>>, vector<1x8x32xf32>
    %12 = vector.shape_cast %11 : vector<1x8x32xf32> to vector<8x32xf32>
    %c1_12 = arith.constant 1 : index
    %c0_13 = arith.constant 0 : index
    %c0_14 = arith.constant 0 : index
    %13 = vector.load %arg3[%c1_12, %c0_13, %c0_14] : memref<2x8x32xf32, #tpu.memory_space<vmem>>, vector<1x8x32xf32>
    %14 = vector.shape_cast %13 : vector<1x8x32xf32> to vector<8x32xf32>
    %15 = arith.addf %4, %12 : vector<8x32xf32>
    %16 = arith.subf %15, %6 : vector<8x32xf32>
    %17 = arith.addf %8, %14 : vector<8x32xf32>
    %18 = arith.subf %17, %10 : vector<8x32xf32>
    %19 = arith.mulf %16, %16 : vector<8x32xf32>
    %cst = arith.constant dense<0.000000e+00> : vector<8xf32>
    %20 = vector.multi_reduction <add>, %19, %cst [1] : vector<8x32xf32> to vector<8xf32>
    %21 = vector.shape_cast %20 : vector<8xf32> to vector<8x1xf32>
    %22 = math.sqrt %21 : vector<8x1xf32>
    %23 = arith.mulf %18, %18 : vector<8x32xf32>
    %cst_15 = arith.constant dense<0.000000e+00> : vector<8xf32>
    %24 = vector.multi_reduction <add>, %23, %cst_15 [1] : vector<8x32xf32> to vector<8xf32>
    %25 = vector.shape_cast %24 : vector<8xf32> to vector<8x1xf32>
    %26 = math.sqrt %25 : vector<8x1xf32>
    %27 = arith.subf %22, %26 : vector<8x1xf32>
    %cst_16 = arith.constant 1.000000e+00 : f32
    %28 = vector.broadcast %cst_16 : f32 to vector<8x1xf32>
    %29 = arith.addf %27, %28 : vector<8x1xf32>
    %cst_17 = arith.constant 0.000000e+00 : f32
    %30 = vector.broadcast %cst_17 : f32 to vector<8x1xf32>
    %31 = arith.maximumf %29, %30 : vector<8x1xf32>
    %32 = arith.mulf %4, %4 : vector<8x32xf32>
    %cst_18 = arith.constant dense<0.000000e+00> : vector<8xf32>
    %33 = vector.multi_reduction <add>, %32, %cst_18 [1] : vector<8x32xf32> to vector<8xf32>
    %34 = vector.shape_cast %33 : vector<8xf32> to vector<8x1xf32>
    %cst_19 = arith.constant 1.000000e+00 : f32
    %35 = vector.broadcast %cst_19 : f32 to vector<8x1xf32>
    %36 = arith.subf %34, %35 : vector<8x1xf32>
    %cst_20 = arith.constant 0.000000e+00 : f32
    %37 = vector.broadcast %cst_20 : f32 to vector<8x1xf32>
    %38 = arith.maximumf %36, %37 : vector<8x1xf32>
    %39 = arith.mulf %6, %6 : vector<8x32xf32>
    %cst_21 = arith.constant dense<0.000000e+00> : vector<8xf32>
    %40 = vector.multi_reduction <add>, %39, %cst_21 [1] : vector<8x32xf32> to vector<8xf32>
    %41 = vector.shape_cast %40 : vector<8xf32> to vector<8x1xf32>
    %cst_22 = arith.constant 1.000000e+00 : f32
    %42 = vector.broadcast %cst_22 : f32 to vector<8x1xf32>
    %43 = arith.subf %41, %42 : vector<8x1xf32>
    %cst_23 = arith.constant 0.000000e+00 : f32
    %44 = vector.broadcast %cst_23 : f32 to vector<8x1xf32>
    %45 = arith.maximumf %43, %44 : vector<8x1xf32>
    %46 = arith.addf %38, %45 : vector<8x1xf32>
    %47 = arith.mulf %8, %8 : vector<8x32xf32>
    %cst_24 = arith.constant dense<0.000000e+00> : vector<8xf32>
    %48 = vector.multi_reduction <add>, %47, %cst_24 [1] : vector<8x32xf32> to vector<8xf32>
    %49 = vector.shape_cast %48 : vector<8xf32> to vector<8x1xf32>
    %cst_25 = arith.constant 1.000000e+00 : f32
    %50 = vector.broadcast %cst_25 : f32 to vector<8x1xf32>
    %51 = arith.subf %49, %50 : vector<8x1xf32>
    %cst_26 = arith.constant 0.000000e+00 : f32
    %52 = vector.broadcast %cst_26 : f32 to vector<8x1xf32>
    %53 = arith.maximumf %51, %52 : vector<8x1xf32>
    %54 = arith.addf %46, %53 : vector<8x1xf32>
    %55 = arith.mulf %10, %10 : vector<8x32xf32>
    %cst_27 = arith.constant dense<0.000000e+00> : vector<8xf32>
    %56 = vector.multi_reduction <add>, %55, %cst_27 [1] : vector<8x32xf32> to vector<8xf32>
    %57 = vector.shape_cast %56 : vector<8xf32> to vector<8x1xf32>
    %cst_28 = arith.constant 1.000000e+00 : f32
    %58 = vector.broadcast %cst_28 : f32 to vector<8x1xf32>
    %59 = arith.subf %57, %58 : vector<8x1xf32>
    %cst_29 = arith.constant 0.000000e+00 : f32
    %60 = vector.broadcast %cst_29 : f32 to vector<8x1xf32>
    %61 = arith.maximumf %59, %60 : vector<8x1xf32>
    %62 = arith.addf %54, %61 : vector<8x1xf32>
    %63 = arith.mulf %12, %12 : vector<8x32xf32>
    %cst_30 = arith.constant dense<0.000000e+00> : vector<8xf32>
    %64 = vector.multi_reduction <add>, %63, %cst_30 [1] : vector<8x32xf32> to vector<8xf32>
    %65 = vector.shape_cast %64 : vector<8xf32> to vector<8x1xf32>
    %cst_31 = arith.constant 1.000000e+00 : f32
    %66 = vector.broadcast %cst_31 : f32 to vector<8x1xf32>
    %67 = arith.subf %65, %66 : vector<8x1xf32>
    %cst_32 = arith.constant 0.000000e+00 : f32
    %68 = vector.broadcast %cst_32 : f32 to vector<8x1xf32>
    %69 = arith.maximumf %67, %68 : vector<8x1xf32>
    %70 = arith.mulf %14, %14 : vector<8x32xf32>
    %cst_33 = arith.constant dense<0.000000e+00> : vector<8xf32>
    %71 = vector.multi_reduction <add>, %70, %cst_33 [1] : vector<8x32xf32> to vector<8xf32>
    %72 = vector.shape_cast %71 : vector<8xf32> to vector<8x1xf32>
    %cst_34 = arith.constant 1.000000e+00 : f32
    %73 = vector.broadcast %cst_34 : f32 to vector<8x1xf32>
    %74 = arith.subf %72, %73 : vector<8x1xf32>
    %cst_35 = arith.constant 0.000000e+00 : f32
    %75 = vector.broadcast %cst_35 : f32 to vector<8x1xf32>
    %76 = arith.maximumf %74, %75 : vector<8x1xf32>
    %77 = arith.addf %69, %76 : vector<8x1xf32>
    %c2_i32 = arith.constant 2 : i32
    %78 = arith.muli %arg0, %c2_i32 : i32
    %79 = arith.addi %78, %arg1 : i32
    %80 = tpu.iota {dimensions = array<i32: 0>} : vector<8x1xi32>
    %c8_i32 = arith.constant 8 : i32
    %81 = arith.muli %79, %c8_i32 : i32
    %82 = vector.broadcast %81 : i32 to vector<8x1xi32>
    %83 = arith.addi %80, %82 : vector<8x1xi32>
    %c20_i32 = arith.constant 20 : i32
    %84 = vector.broadcast %c20_i32 : i32 to vector<8x1xi32>
    %85 = arith.cmpi slt, %83, %84 : vector<8x1xi32>
    %cst_36 = arith.constant 0.000000e+00 : f32
    %86 = vector.broadcast %cst_36 : f32 to vector<8x1xf32>
    %87 = arith.select %85, %31, %86 : vector<8x1xi1>, vector<8x1xf32>
    %cst_37 = arith.constant 0.000000e+00 : f32
    %88 = vector.broadcast %cst_37 : f32 to vector<8x1xf32>
    %89 = arith.select %85, %62, %88 : vector<8x1xi1>, vector<8x1xf32>
    %cst_38 = arith.constant 0.000000e+00 : f32
    %90 = vector.broadcast %cst_38 : f32 to vector<8x1xf32>
    %91 = arith.select %85, %77, %90 : vector<8x1xi1>, vector<8x1xf32>
    %c0_39 = arith.constant 0 : index
    %92 = memref.load %arg5[%c0_39] : memref<3xf32, #tpu.memory_space<smem>>
    %93 = vector.shape_cast %87 : vector<8x1xf32> to vector<1x8x1xf32>
    %cst_40 = arith.constant dense<0.000000e+00> : vector<1xf32>
    %94 = vector.multi_reduction <add>, %93, %cst_40 [1, 2] : vector<1x8x1xf32> to vector<1xf32>
    %95 = vector.shape_cast %94 : vector<1xf32> to vector<1x1x1xf32>
    %96 = vector.extract %95[0, 0, 0] : f32 from vector<1x1x1xf32>
    %97 = arith.addf %92, %96 : f32
    %c0_41 = arith.constant 0 : index
    %98 = memref.load %arg5[%c0_41] : memref<3xf32, #tpu.memory_space<smem>>
    memref.store %97, %arg5[%c0_41] : memref<3xf32, #tpu.memory_space<smem>>
    %c1_42 = arith.constant 1 : index
    %99 = memref.load %arg5[%c1_42] : memref<3xf32, #tpu.memory_space<smem>>
    %100 = vector.shape_cast %89 : vector<8x1xf32> to vector<1x8x1xf32>
    %cst_43 = arith.constant dense<0.000000e+00> : vector<1xf32>
    %101 = vector.multi_reduction <add>, %100, %cst_43 [1, 2] : vector<1x8x1xf32> to vector<1xf32>
    %102 = vector.shape_cast %101 : vector<1xf32> to vector<1x1x1xf32>
    %103 = vector.extract %102[0, 0, 0] : f32 from vector<1x1x1xf32>
    %104 = arith.addf %99, %103 : f32
    %c1_44 = arith.constant 1 : index
    %105 = memref.load %arg5[%c1_44] : memref<3xf32, #tpu.memory_space<smem>>
    memref.store %104, %arg5[%c1_44] : memref<3xf32, #tpu.memory_space<smem>>
    %c2_45 = arith.constant 2 : index
    %106 = memref.load %arg5[%c2_45] : memref<3xf32, #tpu.memory_space<smem>>
    %107 = vector.shape_cast %91 : vector<8x1xf32> to vector<1x8x1xf32>
    %cst_46 = arith.constant dense<0.000000e+00> : vector<1xf32>
    %108 = vector.multi_reduction <add>, %107, %cst_46 [1, 2] : vector<1x8x1xf32> to vector<1xf32>
    %109 = vector.shape_cast %108 : vector<1xf32> to vector<1x1x1xf32>
    %110 = vector.extract %109[0, 0, 0] : f32 from vector<1x1x1xf32>
    %111 = arith.addf %106, %110 : f32
    %c2_47 = arith.constant 2 : index
    %112 = memref.load %arg5[%c2_47] : memref<3xf32, #tpu.memory_space<smem>>
    memref.store %111, %arg5[%c2_47] : memref<3xf32, #tpu.memory_space<smem>>
    %c1_i32 = arith.constant 1 : i32
    %113 = arith.cmpi eq, %arg1, %c1_i32 : i32
    %114 = arith.extui %113 : i1 to i32
    %c0_i32_48 = arith.constant 0 : i32
    %115 = arith.cmpi ne, %114, %c0_i32_48 : i32
    scf.if %115 {
      %c0_49 = arith.constant 0 : index
      %116 = memref.load %arg5[%c0_49] : memref<3xf32, #tpu.memory_space<smem>>
      %cst_50 = arith.constant 5.000000e-02 : f32
      %117 = arith.mulf %116, %cst_50 : f32
      %c1_51 = arith.constant 1 : index
      %118 = memref.load %arg5[%c1_51] : memref<3xf32, #tpu.memory_space<smem>>
      %cst_52 = arith.constant 5.000000e-02 : f32
      %cst_53 = arith.constant 2.500000e-01 : f32
      %119 = arith.mulf %cst_52, %cst_53 : f32
      %120 = arith.mulf %118, %119 : f32
      %c2_54 = arith.constant 2 : index
      %121 = memref.load %arg5[%c2_54] : memref<3xf32, #tpu.memory_space<smem>>
      %cst_55 = arith.constant 5.000000e-02 : f32
      %cst_56 = arith.constant 5.000000e-01 : f32
      %122 = arith.mulf %cst_55, %cst_56 : f32
      %123 = arith.mulf %121, %122 : f32
      %124 = arith.addf %120, %123 : f32
      %cst_57 = arith.constant 2.500000e-01 : f32
      %125 = arith.mulf %cst_57, %124 : f32
      %126 = arith.addf %117, %125 : f32
      %cst_58 = arith.constant 1.000000e+00 : f32
      %127 = vector.broadcast %cst_58 : f32 to vector<1x8x128xf32>
      %128 = vector.broadcast %126 : f32 to vector<1x8x128xf32>
      %129 = arith.mulf %128, %127 : vector<1x8x128xf32>
      %c0_59 = arith.constant 0 : index
      %c0_60 = arith.constant 0 : index
      %c0_61 = arith.constant 0 : index
      %130 = vector.load %arg4[%c0_59, %c0_60, %c0_61] : memref<1x8x128xf32, #tpu.memory_space<vmem>>, vector<1x8x128xf32>
      tpu.vector_store %arg4[%c0_59, %c0_60, %c0_61], %129 {strides = array<i32>} : memref<1x8x128xf32, #tpu.memory_space<vmem>>, vector<1x8x128xf32>,
    } else {
    }
    return
  }
  func.func @transform_0(%arg0: i32, %arg1: i32) -> (i32, i32, i32) {
    %c2_i32 = arith.constant 2 : i32
    %0 = arith.muli %arg0, %c2_i32 : i32
    %1 = arith.addi %0, %arg1 : i32
    %c0_i32 = arith.constant 0 : i32
    %c0_i32_0 = arith.constant 0 : i32
    %c0_i32_1 = arith.constant 0 : i32
    return %c0_i32, %1, %c0_i32_0 : i32, i32, i32
  }
  func.func @transform_1(%arg0: i32, %arg1: i32) -> (i32, i32, i32) {
    %c2_i32 = arith.constant 2 : i32
    %0 = arith.muli %arg0, %c2_i32 : i32
    %1 = arith.addi %0, %arg1 : i32
    %c0_i32 = arith.constant 0 : i32
    %c0_i32_0 = arith.constant 0 : i32
    %c0_i32_1 = arith.constant 0 : i32
    return %c0_i32, %1, %c0_i32_0 : i32, i32, i32
  }
  func.func @transform_2(%arg0: i32, %arg1: i32) -> (i32, i32, i32) {
    %c0_i32 = arith.constant 0 : i32
    %c0_i32_0 = arith.constant 0 : i32
    %c0_i32_1 = arith.constant 0 : i32
    return %arg0, %c0_i32, %c0_i32_0 : i32, i32, i32
  }
}

</mosaic_0001>

<bundles_post_ra>
// kernel: transe_forward.1
= control target key start
LH: loop header
LB: loop body
LE: loop exit
PB: predicated region body
PF: predicated region fallthrough
CT: control target
= control target key end

     0   :  { %s709_s9 = smov 0   ;;  %s711_s10 = smov 0   ;;  %s834_s0 = inlined_call_operand.vmem [shape: f32[4,20,32], index: 0, kind: input, shape index: {}]   ;;  %s835_s1 = inlined_call_operand.vmem [shape: f32[2,20,32], index: 1, kind: input, shape index: {}]   ;;  %s836_s2 = inlined_call_operand.vmem [shape: f32[2,8,128], index: 2, kind: output, shape index: {}]  }
   0x1   :  { %s713_s11 = smov 0   ;;  %s715_s12 = smov 0  }
   0x2   :  { %s717_s13 = smov 0   ;;  %s719_s14 = smov 0  }
   0x3   :  { %s721_s15 = smov 0  }
   0x4 LB: > { %s21_s16 = sadd.s32 1, %s683_s13  ;;  %s24_s17 = sadd.s32 1, %s687_s14  ;;  %s691_s15 = sphi %s721_s15, %s12_s15   ;;  %s687_s14 = sphi %s719_s14, %s843_s14   ;;  %s683_s13 = sphi %s717_s13, %s842_s13   ;;  %s679_s12 = sphi %s715_s12, %s841_s12   ;;  %s675_s11 = sphi %s713_s11, %s840_s11   ;;  %s671_s10 = sphi %s711_s10, %s839_s10   ;;  %s667_s9 = sphi %s709_s9, %s838_s9  }
   0x5   : > { %p22_p0 = scmp.ge.s32.totalorder %s21_s16, 2  ;;  %p42_p1 = scmp.ne.s32.totalorder %s671_s10, %s667_s9 }
   0x6   : > { %p43_p2 = scmp.eq.s32.totalorder %s691_s15, 0  ;;  %s529_s18 = sshll.u32 %s687_s14, 1 }
   0x7   : > { %s845_s16 = smov (%p22_p0, %s21_s16), 0  ;;  %s847_s17 = smov (!%p22_p0, %s24_s17), %s687_s14 }
   0x8   : > { %p26_p3 = scmp.ge.s32.totalorder %s847_s17, 2  ;;  %p753_p4 = por %p43_p2, %p42_p1 }
   0x9   : > { %s760_s20 = sadd.s32 %s683_s13, %s529_s18  ;;  %s35_s24 = sadd.s32 1, %s671_s10 }
   0xa   : > { %s849_s17 = smov (%p26_p3, %s847_s17), 0  ;;  %p534_p6 = scmp.ge.s32.totalorder %s691_s15, 4 }
   0xb   : > { %s530_s21 = sshll.u32 %s849_s17, 1 }
   0xc   : > { %s31_s22 = sadd.s32 %s530_s21, %s845_s16  ;;  %124 = sbr.rel (%p534_p6) target bundleno = 28 (0x1c), region = 16 }
   0xd   : > { %s32_s23 = ssub.s32 %s760_s20, %s31_s22 }
   0xe   : > { %p33_p5 = scmp.eq.s32.totalorder %s32_s23, 0 }
  0x10   : > { %s767_s25 = scalar_select %p33_p5, %s671_s10, %s35_s24  }
  0x11   : > { %127 = sbr.rel (!%p753_p4) target bundleno = 23 (0x17), region = 20  ;;  %s129_s26 = sand.u32 (%p753_p4), 1, %s671_s10  }
  0x12   : > { %s537_s27 = sshll.u32 (%p753_p4), %s760_s20, 3  ;;  %s535_s28 = sshll.u32 (%p753_p4), %s129_s26, 5 }
  0x13   : > { %s135_s3 = scalar_lea.vmem (%p753_p4), %s834_s0, %s537_s27  ;;  %s131_s4 = scalar_lea.vmem (%p753_p4), [#allocation3], %s535_s28 }
  0x14   : > { %v170_v0 = vld [vmem:[%s135_s3] sm:$0xff] (%p753_p4)  ;;  %v172_v1 = vld [vmem:[%s135_s3 + $0x18] sm:$0xff] (%p753_p4)  ;;  %v174_v2 = vld [vmem:[%s135_s3 + $0x30] sm:$0xff] (%p753_p4) }
  0x15   : > { %171 = vst [vmem:[%s131_s4] sm:$0xff] (%p753_p4), %v170_v0  ;;  %173 = vst [vmem:[%s131_s4 + $0x8] sm:$0xff] (%p753_p4), %v172_v1  ;;  %v176_v3 = vld [vmem:[%s135_s3 + $0x48] sm:$0xff] (%p753_p4) }
  0x16   : > { %175 = vst [vmem:[%s131_s4 + $0x10] sm:$0xff] %v174_v2  ;;  %177 = vst [vmem:[%s131_s4 + $0x18] sm:$0xff] %v176_v3 }
  0x17 PF: > { %183 = sbr.rel (!%p753_p4) target bundleno = 28 (0x1c), region = 58  ;;  %s185_s5 = sand.u32 (%p753_p4), 1, %s671_s10  }
  0x18   : > { %s540_s6 = sshll.u32 (%p753_p4), %s760_s20, 3  ;;  %s538_s7 = sshll.u32 (%p753_p4), %s185_s5, 4 }
  0x19   : > { %s191_s21 = scalar_lea.vmem (%p753_p4), %s835_s1, %s540_s6  ;;  %s187_s22 = scalar_lea.vmem (%p753_p4), [#allocation4], %s538_s7 }
  0x1a   : > { %v222_v4 = vld [vmem:[%s191_s21] sm:$0xff] (%p753_p4)  ;;  %v224_v5 = vld [vmem:[%s191_s21 + $0x18] sm:$0xff] (%p753_p4) }
  0x1b   : > { %223 = vst [vmem:[%s187_s22] sm:$0xff] (%p753_p4), %v222_v4  ;;  %225 = vst [vmem:[%s187_s22 + $0x8] sm:$0xff] (%p753_p4), %v224_v5 }
  0x1c PF: > { %p541_p7 = scmp.ge.s32.totalorder %s691_s15, 1  ;;  %p230_p8 = scmp.lt.s32.totalorder %s691_s15, 5 }
  0x1e   : > { %p231_p9 = pnand %p541_p7, %p230_p8 }
  0x1f   : > { %s237_s19 = sand.u32 (!%p231_p9), 1, %s667_s9   ;;  %s556_s9 = sshll.u32 (!%p231_p9), %s679_s12, 1 }
  0x20   : > { %234 = sbr.rel (%p231_p9) target bundleno = 438 (0x1b6), region = 96  ;;  %s542_s20 = sshll.u32 (!%p231_p9), %s237_s19, 5 }
  0x21   : > { %s543_s23 = sshll.u32 (!%p231_p9), %s237_s19, 4  ;;  %s239_s24 = scalar_lea.vmem (!%p231_p9), [#allocation3], %s542_s20 }
  0x22   : > { %s246_s26 = scalar_lea.vmem (!%p231_p9), [#allocation4], %s543_s23  ;;  %s367_s27 = sadd.s32 (!%p231_p9), %s675_s11, %s556_s9 }
  0x23   : > { %s557_s28 = sshll.u32 (!%p231_p9), %s367_s27, 3  ;;  %p272_p10 = scmp.lt.s32.totalorder (!%p231_p9), %s679_s12, 1 }
  0x24   : > { %p575_p11 = scmp.eq.s32.totalorder (!%p231_p9), %s675_s11, 0  ;;  %s693_s5 = smov (!%p231_p9), 0.0  }
  0x25   : > { %v286_v6 = vld [vmem:[%s239_s24] sm:$0xff]  ;;  %v546_v7 = vld [vmem:[%s239_s24 + $0x8] sm:$0xff]  ;;  %v547_v11 = vld [vmem:[%s239_s24 + $0x10] sm:$0xff]  ;;  %vm301_vm0 = vcmask 261120   ;;  %v368_v37 = vlaneseq  ;;  %v371_v44 = vstv %s557_s28  ;;  %vm378_vm2 = vcmask 7168   ;;  %s851_s12 = smov (!%p272_p10, %s679_s12), 1 }
  0x26   : > { %v293_v8 = vld [vmem:[%s246_s26] sm:$0xff]  ;;  %v326_v10 = vmul.f32 %v286_v6, %v286_v6  ;;  %v548_v12 = vld [vmem:[%s239_s24 + $0x18] sm:$0xff]  ;;  %v332_v14 = vmul.f32 %v546_v7, %v546_v7  ;;  %v339_v25 = vmul.f32 %v547_v11, %v547_v11  ;;  %s544_s29 = sshll.u32 %s851_s12, 3  ;;  %572 = sst [smem:[#allocation2]] (%p575_p11), %s693_s5 }
  0x27   : > { %v296_v9 = vadd.f32 %v293_v8, %v286_v6  ;;  %v549_v13 = vld [vmem:[%s246_s26 + $0x8] sm:$0xff]  ;;  %v346_v21 = vmul.f32 %v548_v12, %v548_v12  ;;  %v353_v30 = vmul.f32 %v293_v8, %v293_v8  ;;  %v369_v42 = vshrl.u32 %v368_v37, 7  ;;  %s808_s4 = scalar_lea.vmem %s836_s2, %s544_s29  ;;  %573 = sst [smem:[#allocation2 + $0x1]] (%p575_p11), %s693_s5 }
  0x28   : > { %v298_v15 = vadd.f32 %v549_v13, %v547_v11  ;;  %v327_v17 = vsel %vm301_vm0, %v326_v10, 0.0  ;;  %v333_v20 = vsel %vm301_vm0, %v332_v14, 0.0  ;;  %v359_v27 = vmul.f32 %v549_v13, %v549_v13  ;;  %574 = sst [smem:[#allocation2 + $0x2]] (%p575_p11), %s693_s5  ;;  %p560_p12 = scmp.ne.s32.totalorder %s675_s11, 1 }
  0x29   : > { %v297_v16 = vsub.f32 %v296_v9, %v546_v7  ;;  %328 = vadd.xlane.f32.xlu1 %v327_v17  ;;  %v347_v26 = vsel %vm301_vm0, %v346_v21, 0.0  ;;  %v340_v28 = vsel %vm301_vm0, %v339_v25, 0.0  ;;  %v354_v31 = vsel %vm301_vm0, %v353_v30, 0.0  ;;  %s377_s12 = sld [smem:[#allocation2]] }
  0x2a   : > { %v299_v18 = vsub.f32 %v298_v15, %v548_v12  ;;  %v360_v29 = vsel %vm301_vm0, %v359_v27, 0.0  ;;  %v372_v48 = vadd.s32 %v371_v44, %v369_v42  ;;  %s558_s6 = sld [smem:[#allocation2 + $0x1]] }
  0x2b   : > { %v300_v19 = vmul.f32 %v297_v16, %v297_v16  ;;  %s559_s7 = sld [smem:[#allocation2 + $0x2]] }
  0x2c   : > { %v312_v22 = vmul.f32 %v299_v18, %v299_v18  ;;  %vm373_vm1 = vcmp.lt.s32.totalorder %v372_v48, 20 }
  0x2d   : > { %v302_v23 = vsel %vm301_vm0, %v300_v19, 0.0  ;;  %334 = vadd.xlane.f32.xlu1 %v333_v20 }
  0x2e   : > { %303 = vadd.xlane.f32.xlu0 %v302_v23  ;;  %v313_v24 = vsel %vm301_vm0, %v312_v22, 0.0 }
  0x31   : > { %348 = vadd.xlane.f32.xlu1 %v347_v26 }
  0x32   : > { %314 = vadd.xlane.f32.xlu0 %v313_v24 }
  0x35   : > { %361 = vadd.xlane.f32.xlu1 %v360_v29 }
  0x36   : > { %341 = vadd.xlane.f32.xlu0 %v340_v28 }
  0x3a   : > { %355 = vadd.xlane.f32.xlu0 %v354_v31 }
  0xb2   : > { %v329_v32 = vpop.xlane.xlu1 %328 }
  0xb3   : > { %v550_v35 = vadd.f32 -1.0, %v329_v32 }
  0xb5   : > { %v331_v40 = vmax.f32 %v550_v35, 0.0 }
  0xb6   : > { %v335_v34 = vpop.xlane.xlu1 %334 }
  0xb7   : > { %v304_v33 = vpop.xlane.xlu0 %303  ;;  %v551_v36 = vadd.f32 -1.0, %v335_v34 }
  0xb8   : > { %633 = vrsqrt.f32 %v304_v33  ;;  %vm307_vm3 = vcmp.eq.f32.partialorder %v304_v33, inf  ;;  %vm309_vm4 = vcmp.eq.f32.partialorder %v304_v33, 0.0  ;;  %v310_v0 = vand.u32 2147483648, %v304_v33 }
  0xb9   : > { %v337_v41 = vmax.f32 %v551_v36, 0.0 }
  0xba   : > { %v349_v39 = vpop.xlane.xlu1 %348 }
  0xbb   : > { %v315_v38 = vpop.xlane.xlu0 %314  ;;  %v553_v43 = vadd.f32 -1.0, %v349_v39  ;;  %v338_v46 = vadd.f32 %v337_v41, %v331_v40 }
  0xbc   : > { %635 = vrsqrt.f32 %v315_v38  ;;  %vm318_vm5 = vcmp.eq.f32.partialorder %v315_v38, inf  ;;  %v321_v1 = vand.u32 2147483648, %v315_v38  ;;  %vm320_vm6 = vcmp.eq.f32.partialorder %v315_v38, 0.0 }
  0xbd   : > { %v351_v50 = vmax.f32 %v553_v43, 0.0 }
  0xbe   : > { %v362_v53 = vpop.xlane.xlu1 %361 }
  0xbf   : > { %v342_v45 = vpop.xlane.xlu0 %341  ;;  %v555_v58 = vadd.f32 -1.0, %v362_v53 }
  0xc0   : > { %v552_v47 = vadd.f32 -1.0, %v342_v45 }
  0xc1   : > { %v364_v2 = vmax.f32 %v555_v58, 0.0 }
  0xc2   : > { %v344_v49 = vmax.f32 %v552_v47, 0.0 }
  0xc3   : > { %v356_v54 = vpop.xlane.xlu0 %355 }
  0xc4   : > { %v345_v51 = vadd.f32 %v344_v49, %v338_v46  ;;  %v554_v59 = vadd.f32 -1.0, %v356_v54 }
  0xc5   : > { %v634_v52 = vpop.eup %633 }
  0xc6   : > { %v306_v55 = vmul.f32 %v634_v52, %v304_v33  ;;  %v352_v56 = vadd.f32 %v351_v50, %v345_v51  ;;  %v358_v3 = vmax.f32 %v554_v59, 0.0 }
  0xc8   : > { %v375_v57 = vsel %vm373_vm1, %v352_v56, 0.0  ;;  %v308_v63 = vsel %vm307_vm3, %v304_v33, %v306_v55  ;;  %v365_v8 = vadd.f32 %v364_v2, %v358_v3 }
  0xc9   : > { %v636_v60 = vpop.eup %635  ;;  %v393_v61 = vsel %vm378_vm2, %v375_v57, 0.0  ;;  %v311_v5 = vsel %vm309_vm4, %v310_v0, %v308_v63 }
  0xca   : > { %v317_v62 = vmul.f32 %v636_v60, %v315_v38  ;;  %394 = vadd.xlane.f32.xlu1 %v393_v61  ;;  %v376_v12 = vsel %vm373_vm1, %v365_v8, 0.0 }
  0xcb   : > { %v407_v14 = vsel %vm378_vm2, %v376_v12, 0.0 }
  0xcc   : > { %v319_v4 = vsel %vm318_vm5, %v315_v38, %v317_v62 }
  0xcd   : > { %v322_v6 = vsel %vm320_vm6, %v321_v1, %v319_v4 }
  0xce   : > { %v323_v7 = vsub.f32 %v311_v5, %v322_v6 }
  0xd0   : > { %v324_v9 = vadd.f32 1.0, %v323_v7 }
  0xd2   : > { %v325_v10 = vmax.f32 %v324_v9, 0.0 }
  0xd4   : > { %v374_v11 = vsel %vm373_vm1, %v325_v10, 0.0 }
  0xd5   : > { %v379_v13 = vsel %vm378_vm2, %v374_v11, 0.0 }
  0xd6   : > { %380 = vadd.xlane.f32.xlu0 %v379_v13 }
  0xda   : > { %408 = vadd.xlane.f32.xlu0 %v407_v14 }
 0x153   : > { %v395_v15 = vpop.xlane.xlu1 %394 }
 0x154   : > { %v396_v16 = vrot.slane %v395_v15, 4 }
 0x156   : > { %v397_v17 = vadd.f32 %v396_v16, %v395_v15 }
 0x158   : > { %v398_v18 = vrot.slane %v397_v17, 2 }
 0x15a   : > { %v399_v22 = vadd.f32 %v398_v18, %v397_v17 }
 0x15c   : > { %v400_v28 = vrot.slane %v399_v22, 1 }
 0x15e   : > { %v401_v33 = vadd.f32 %v400_v28, %v399_v22 }
 0x15f   : > { %v381_v19 = vpop.xlane.xlu0 %380 }
 0x160   : > { %v382_v20 = vrot.slane %v381_v19, 4 }
 0x162   : > { %v383_v21 = vadd.f32 %v382_v20, %v381_v19 }
 0x163   : > { %v409_v23 = vpop.xlane.xlu0 %408 }
 0x164   : > { %v384_v24 = vrot.slane %v383_v21, 2  ;;  %v410_v25 = vrot.slane %v409_v23, 4 }
 0x166   : > { %v411_v26 = vadd.f32 %v410_v25, %v409_v23  ;;  %v385_v27 = vadd.f32 %v384_v24, %v383_v21 }
 0x168   : > { %v412_v29 = vrot.slane %v411_v26, 2  ;;  %v386_v30 = vrot.slane %v385_v27, 1 }
 0x16a   : > { %v413_v31 = vadd.f32 %v412_v29, %v411_v26  ;;  %v387_v32 = vadd.f32 %v386_v30, %v385_v27 }
 0x16c   : > { %565 = vpush %v387_v32  ;;  %v414_v34 = vrot.slane %v413_v31, 1 }
 0x16d   : > { %567 = vpush %v401_v33 }
 0x16e   : > { %v415_v35 = vadd.f32 %v414_v34, %v413_v31 }
 0x170   : > { %569 = vpush %v415_v35 }
 0x19d   : > { %s566_s8 = spop %565 }
 0x19e   : > { %s389_s18 = sadd.f32 %s566_s8, %s377_s12  ;;  %s568_s21 = spop %567 }
 0x19f   : > { %s403_s22 = sadd.f32 %s568_s21, %s558_s6 }
 0x1a0   : > { %391 = sst [smem:[#allocation2]] %s389_s18  ;;  %423 = sbr.rel (%p560_p12) target bundleno = 438 (0x1b6), region = 112 }
 0x1a1   : > { %405 = sst [smem:[#allocation2 + $0x1]] %s403_s22  ;;  %s570_s19 = spop %569 }
 0x1a2   : > { %s417_s20 = sadd.f32 %s570_s19, %s559_s7 }
 0x1a3   : > { %s424_s23 = sld [smem:[#allocation2]] (!%p560_p12) }
 0x1a4   : > { %419 = sst [smem:[#allocation2 + $0x2]] %s417_s20 }
 0x1a5   : > { %s561_s24 = sld [smem:[#allocation2 + $0x1]] }
 0x1a6   : > { %s562_s26 = sld [smem:[#allocation2 + $0x2]] }
 0x1a9   : > { %s425_s28 = smul.f32 0.05, %s424_s23 }
 0x1ab   : > { %s427_s9 = smul.f32 0.0125, %s561_s24 }
 0x1ac   : > { %s429_s27 = smul.f32 0.025, %s562_s26 }
 0x1ae   : > { %s430_s29 = sadd.f32 %s429_s27, %s427_s9 }
 0x1b0   : > { %s431_s30 = smul.f32 0.25, %s430_s29 }
 0x1b2   : > { %s432_s3 = sadd.f32 %s431_s30, %s425_s28 }
 0x1b4   : > { %v433_v36 = vstv %s432_s3 }
 0x1b5   : > { %434 = vst [vmem:[%s808_s4] sm:$0xff] %v433_v36 }
 0x1b6 PF: > { %s12_s15 = sadd.s32 1, %s691_s15   ;;  %s838_s9 = smov %s671_s10 }
 0x1b7   : > { %p9_p13 = scmp.ge.s32.totalorder %s12_s15, 6   ;;  %s839_s10 = smov %s767_s25 }
 0x1b8   : > { %s840_s11 = smov %s683_s13  ;;  %s841_s12 = smov %s687_s14 }
 0x1b9   : > { %s842_s13 = smov %s845_s16  ;;  %s843_s14 = smov %s849_s17 }
 0x1ba   :  { %11 = sbr.rel (!%p9_p13) target bundleno = 4 (0x4), region = 165 }

</bundles_post_ra>
